<compile_context>
chip_gen: v5e
topology: v5e:2x2
jax: 0.10.0
libtpu: 0.0.40
codegen_flags: <defaults>
</compile_context>

<pallas_src>
import functools

import jax
import jax.numpy as jnp
from jax import lax
from jax.experimental import pallas as pl
from jax.experimental.pallas import tpu as pltpu

H, W = 8, 7
IN_FLAT = H * W          # 56 input pixels per sample
OH, OW = 5, 6            # conv output spatial size (same for both convs)
PW = OW // 2             # pooled width = 3
NPOS = OH * PW           # 15 pooled spatial positions
C1, C3 = 12, 16
CTOT = C1 + C3           # 28 concatenated channels
FLAT = CTOT * NPOS       # 420 flattened features
HALF_PAD = 424           # 420 rounded up to a multiple of 8 (sublane quantum)
NOUT = 3
NOUT_PAD = 8             # output feature dim padded to 8 (32 B/sample writes)


def _round_up(v, m):
    return ((v + m - 1) // m) * m


def _fused_kernel(x_ref, wb_ref, bc_ref, wl_ref, bl_ref, o_ref):
    # x_ref : (TB, 56)        raw flattened images, batch-major
    # wb_ref: (2, 56, 424)    conv-as-dense weights for even/odd pooled column
    # bc_ref: (1, 424)        conv bias per flattened feature (bias[c] x 15 pos)
    # wl_ref: (424, 8)        linear weight (zero-padded rows/cols)
    # bl_ref: (1, 8)          zero-padded linear bias
    # o_ref : (TB, 8)
    x = x_ref[...]
    even = jnp.dot(x, wb_ref[0], preferred_element_type=jnp.float32)  # (TB, 424)
    odd = jnp.dot(x, wb_ref[1], preferred_element_type=jnp.float32)   # (TB, 424)
    # MaxPool2d((1,2)) + conv bias (shared by both pooled columns) + ReLU.
    act = jnp.maximum(jnp.maximum(even, odd) + bc_ref[...], 0.0)      # (TB, 424)
    o_ref[...] = jnp.dot(act, wl_ref[...],
                         preferred_element_type=jnp.float32) + bl_ref[...]


def _conv_as_dense(w1, b1, w3, b3):
    """Fold conv1 + conv3 + cat into two (56, 424) dense matrices + (1, 424) bias.

    Runs the convolutions on the 56 one-hot basis images, so the matrix is
    exactly the linear map pixels -> concatenated conv outputs, split by pooled
    column parity and ordered to match torch's flatten (f = c*15 + oh*3 + wp).
    """
    dn = ("NCHW", "OIHW", "NCHW")
    hp = lax.Precision.HIGHEST
    eye = jnp.eye(IN_FLAT, dtype=jnp.float32).reshape(IN_FLAT, 1, H, W)
    c1 = lax.conv_general_dilated(eye, w1, (1, 1), [(0, 0), (0, 0)],
                                  dimension_numbers=dn, precision=hp)
    c3 = lax.conv_general_dilated(eye, w3, (1, 1), [(0, 0), (1, 1)],
                                  dimension_numbers=dn, precision=hp)
    basis = jnp.concatenate([c1, c3], axis=1)            # (56, 28, 5, 6)
    basis = basis.reshape(IN_FLAT, CTOT, OH, PW, 2)      # ow -> (wp, parity)
    wb = jnp.transpose(basis, (4, 0, 1, 2, 3)).reshape(2, IN_FLAT, FLAT)
    wb = jnp.pad(wb, ((0, 0), (0, 0), (0, HALF_PAD - FLAT)))        # (2, 56, 424)
    bias = jnp.concatenate([b1, b3])                                 # (28,)
    bc = jnp.pad(jnp.repeat(bias, NPOS), (0, HALF_PAD - FLAT))
    return wb, bc.reshape(1, HALF_PAD)


def _choose_tiling(n, tb):
    """Pick (tb_eff, n_pad): tb_eff multiple of 8; >=4 grid steps for larger n
    (so v7x's two TensorCores each get >=2 blocks) with small batch padding."""
    n8 = _round_up(n, 8)
    tb_cap = _round_up(min(max(tb, 8), 4096), 8)
    if n8 <= 256:                       # tiny batch: one block, minimal padding
        return n8, n8
    tb_eff = max(8, min(tb_cap, _round_up(-(-n8 // 4), 8)))
    return tb_eff, _round_up(n8, tb_eff)


@functools.partial(jax.jit, static_argnames=("tb",))
def multi_conv_forward(x, params, tb=1024):
    """x: (N, 1, 8, 7) float32 NCHW. Returns (N, 3) float32."""
    w1, b1, w3, b3, wl, bl = params
    n = x.shape[0]
    tb_eff, n_pad = _choose_tiling(n, tb)

    x2d = x.reshape(n, IN_FLAT).astype(jnp.float32)      # (N, 56), free reshape
    if n_pad != n:
        x2d = jnp.pad(x2d, ((0, n_pad - n), (0, 0)))

    wb, bc = _conv_as_dense(w1, b1, w3, b3)              # (2,56,424), (1,424)
    wl2 = jnp.pad(wl.T, ((0, HALF_PAD - FLAT), (0, NOUT_PAD - NOUT)))  # (424, 8)
    bl2 = jnp.pad(bl, (0, NOUT_PAD - NOUT)).reshape(1, NOUT_PAD)       # (1, 8)

    flops = 2 * n_pad * (2 * IN_FLAT * HALF_PAD + HALF_PAD * NOUT_PAD)
    bytes_accessed = 4 * (n_pad * (IN_FLAT + NOUT_PAD)
                          + wb.size + bc.size + wl2.size + bl2.size)

    out = pl.pallas_call(
        _fused_kernel,
        out_shape=jax.ShapeDtypeStruct((n_pad, NOUT_PAD), jnp.float32),
        grid=(n_pad // tb_eff,),
        in_specs=[
            pl.BlockSpec((tb_eff, IN_FLAT), lambda b: (b, 0)),
            pl.BlockSpec((2, IN_FLAT, HALF_PAD), lambda b: (0, 0, 0)),
            pl.BlockSpec((1, HALF_PAD), lambda b: (0, 0)),
            pl.BlockSpec((HALF_PAD, NOUT_PAD), lambda b: (0, 0)),
            pl.BlockSpec((1, NOUT_PAD), lambda b: (0, 0)),
        ],
        out_specs=pl.BlockSpec((tb_eff, NOUT_PAD), lambda b: (b, 0)),
        compiler_params=pltpu.CompilerParams(
            dimension_semantics=("parallel",),
            vmem_limit_bytes=32 * 1024 * 1024),
        cost_estimate=pl.CostEstimate(flops=flops, transcendentals=0,
                                      bytes_accessed=bytes_accessed),
    )(x2d, wb, bc, wl2, bl2)
    return out[:n, :NOUT]


def ref_forward(x, params):
    """Pure-JAX reference matching the PyTorch forward."""
    w1, b1, w3, b3, wl, bl = params
    dn = ("NCHW", "OIHW", "NCHW")
    hp = lax.Precision.HIGHEST
    c1 = lax.conv_general_dilated(x, w1, (1, 1), [(0, 0), (0, 0)],
                                  dimension_numbers=dn, precision=hp)
    c1 = c1 + b1[None, :, None, None]
    c3 = lax.conv_general_dilated(x, w3, (1, 1), [(0, 0), (1, 1)],
                                  dimension_numbers=dn, precision=hp)
    c3 = c3 + b3[None, :, None, None]
    full = jnp.concatenate([c1, c3], axis=1)             # (N, 28, 5, 6)
    pooled = jnp.max(full.reshape(full.shape[0], CTOT, OH, PW, 2), axis=-1)
    act = jnp.maximum(pooled, 0.0)                       # (N, 28, 5, 3)
    flat = act.reshape(act.shape[0], FLAT)
    return jnp.dot(flat, wl.T, precision=hp) + bl[None, :]


if __name__ == "__main__":
    key = jax.random.PRNGKey(0)
    kx, kx2, kx3, k1, k2, k3, k4, k5, k6 = jax.random.split(key, 9)
    # Deterministic synthetic parameters (shapes from the module's __init__).
    w1 = jax.random.normal(k1, (C1, 1, 4, 2), jnp.float32) * 0.2
    b1 = jax.random.normal(k2, (C1,), jnp.float32) * 0.1
    w3 = jax.random.normal(k3, (C3, 1, 4, 4), jnp.float32) * 0.2
    b3 = jax.random.normal(k4, (C3,), jnp.float32) * 0.1
    wl = jax.random.normal(k5, (NOUT, FLAT), jnp.float32) * 0.05
    bl = jax.random.normal(k6, (NOUT,), jnp.float32) * 0.1
    params = (w1, b1, w3, b3, wl, bl)

    # Small batch (single block).
    x = jax.random.normal(kx, (2, 1, H, W), jnp.float32)
    out = jax.block_until_ready(multi_conv_forward(x, params))
    ref = ref_forward(x, params)
    assert out.shape == (2, NOUT), out.shape
    assert jnp.allclose(out, ref, rtol=1e-2, atol=1e-2), (out, ref)

    # Non-multiple-of-8 batch, still single block (20 -> padded to 24).
    xb = jax.random.normal(kx2, (20, 1, H, W), jnp.float32)
    outb = jax.block_until_ready(multi_conv_forward(xb, params))
    refb = ref_forward(xb, params)
    assert outb.shape == (20, NOUT), outb.shape
    assert jnp.allclose(outb, refb, rtol=1e-2, atol=1e-2), (outb, refb)

    # Multi-block grid path (300 -> padded to 320, 4 grid steps of 80).
    xc = jax.random.normal(kx3, (300, 1, H, W), jnp.float32)
    outc = jax.block_until_ready(multi_conv_forward(xc, params))
    refc = ref_forward(xc, params)
    assert outc.shape == (300, NOUT), outc.shape
    assert jnp.allclose(outc, refc, rtol=1e-2, atol=1e-2), (outc, refc)

    print("KERNEL_OK")
</pallas_src>

<mosaic_0001>
module attributes {stable_mosaic.version = 11 : i64} {
  func.func @_fused_kernel(%arg0: i32, %arg1: memref<8x56xf32, #tpu.memory_space<vmem>>, %arg2: memref<2x56x424xf32, #tpu.memory_space<vmem>>, %arg3: memref<1x424xf32, #tpu.memory_space<vmem>>, %arg4: memref<424x8xf32, #tpu.memory_space<vmem>>, %arg5: memref<1x8xf32, #tpu.memory_space<vmem>>, %arg6: memref<8x8xf32, #tpu.memory_space<vmem>>) attributes {dimension_semantics = [#tpu.dimension_semantics<parallel>], iteration_bounds = array<i64: 1>, scalar_prefetch = 0 : i64, scratch_operands = 0 : i64, tpu.core_type = #tpu.core_type<tc>, window_params = [{transform_indices = @transform_0, window_bounds = array<i64: 8, 56>}, {pipeline_mode = #tpu.pipeline_mode<synchronous>, transform_indices = @transform_1, window_bounds = array<i64: 2, 56, 424>}, {pipeline_mode = #tpu.pipeline_mode<synchronous>, transform_indices = @transform_2, window_bounds = array<i64: 1, 424>}, {pipeline_mode = #tpu.pipeline_mode<synchronous>, transform_indices = @transform_3, window_bounds = array<i64: 424, 8>}, {pipeline_mode = #tpu.pipeline_mode<synchronous>, transform_indices = @transform_4, window_bounds = array<i64: 1, 8>}, {transform_indices = @transform_5, window_bounds = array<i64: 8, 8>}]} {
    %c0 = arith.constant 0 : index
    %c0_0 = arith.constant 0 : index
    %0 = vector.load %arg1[%c0, %c0_0] : memref<8x56xf32, #tpu.memory_space<vmem>>, vector<8x56xf32>
    %c0_1 = arith.constant 0 : index
    %c0_2 = arith.constant 0 : index
    %c0_3 = arith.constant 0 : index
    %1 = vector.load %arg2[%c0_1, %c0_2, %c0_3] : memref<2x56x424xf32, #tpu.memory_space<vmem>>, vector<1x56x424xf32>
    %2 = vector.shape_cast %1 : vector<1x56x424xf32> to vector<56x424xf32>
    %cst = arith.constant dense<0.000000e+00> : vector<8x424xf32>
    %3 = tpu.matmul %0, %2, %cst {dimension_numbers = #tpu.dot_dimension_numbers<[1], [0], [0], [1], [0, 0, 1, 1], [], []>} : vector<8x56xf32>, vector<56x424xf32>, vector<8x424xf32> -> vector<8x424xf32>
    %c1 = arith.constant 1 : index
    %c0_4 = arith.constant 0 : index
    %c0_5 = arith.constant 0 : index
    %4 = vector.load %arg2[%c1, %c0_4, %c0_5] : memref<2x56x424xf32, #tpu.memory_space<vmem>>, vector<1x56x424xf32>
    %5 = vector.shape_cast %4 : vector<1x56x424xf32> to vector<56x424xf32>
    %cst_6 = arith.constant dense<0.000000e+00> : vector<8x424xf32>
    %6 = tpu.matmul %0, %5, %cst_6 {dimension_numbers = #tpu.dot_dimension_numbers<[1], [0], [0], [1], [0, 0, 1, 1], [], []>} : vector<8x56xf32>, vector<56x424xf32>, vector<8x424xf32> -> vector<8x424xf32>
    %7 = arith.maximumf %3, %6 : vector<8x424xf32>
    %c0_7 = arith.constant 0 : index
    %c0_8 = arith.constant 0 : index
    %8 = vector.load %arg3[%c0_7, %c0_8] : memref<1x424xf32, #tpu.memory_space<vmem>>, vector<1x424xf32>
    %9 = vector.broadcast %8 : vector<1x424xf32> to vector<8x424xf32>
    %10 = arith.addf %7, %9 : vector<8x424xf32>
    %cst_9 = arith.constant 0.000000e+00 : f32
    %11 = vector.broadcast %cst_9 : f32 to vector<8x424xf32>
    %12 = arith.maximumf %10, %11 : vector<8x424xf32>
    %c0_10 = arith.constant 0 : index
    %c0_11 = arith.constant 0 : index
    %13 = vector.load %arg4[%c0_10, %c0_11] : memref<424x8xf32, #tpu.memory_space<vmem>>, vector<424x8xf32>
    %cst_12 = arith.constant dense<0.000000e+00> : vector<8x8xf32>
    %14 = tpu.matmul %12, %13, %cst_12 {dimension_numbers = #tpu.dot_dimension_numbers<[1], [0], [0], [1], [0, 0, 1, 1], [], []>} : vector<8x424xf32>, vector<424x8xf32>, vector<8x8xf32> -> vector<8x8xf32>
    %c0_13 = arith.constant 0 : index
    %c0_14 = arith.constant 0 : index
    %15 = vector.load %arg5[%c0_13, %c0_14] : memref<1x8xf32, #tpu.memory_space<vmem>>, vector<1x8xf32>
    %16 = vector.broadcast %15 : vector<1x8xf32> to vector<8x8xf32>
    %17 = arith.addf %14, %16 : vector<8x8xf32>
    %c0_15 = arith.constant 0 : index
    %c0_16 = arith.constant 0 : index
    %18 = vector.load %arg6[%c0_15, %c0_16] : memref<8x8xf32, #tpu.memory_space<vmem>>, vector<8x8xf32>
    tpu.vector_store %arg6[%c0_15, %c0_16], %17 {strides = array<i32>} : memref<8x8xf32, #tpu.memory_space<vmem>>, vector<8x8xf32>,
    return
  }
  func.func @transform_0(%arg0: i32) -> (i32, i32) {
    %c0_i32 = arith.constant 0 : i32
    %c0_i32_0 = arith.constant 0 : i32
    return %arg0, %c0_i32 : i32, i32
  }
  func.func @transform_1(%arg0: i32) -> (i32, i32, i32) {
    %c0_i32 = arith.constant 0 : i32
    %c0_i32_0 = arith.constant 0 : i32
    %c0_i32_1 = arith.constant 0 : i32
    %c0_i32_2 = arith.constant 0 : i32
    return %c0_i32, %c0_i32_0, %c0_i32_1 : i32, i32, i32
  }
  func.func @transform_2(%arg0: i32) -> (i32, i32) {
    %c0_i32 = arith.constant 0 : i32
    %c0_i32_0 = arith.constant 0 : i32
    %c0_i32_1 = arith.constant 0 : i32
    return %c0_i32, %c0_i32_0 : i32, i32
  }
  func.func @transform_3(%arg0: i32) -> (i32, i32) {
    %c0_i32 = arith.constant 0 : i32
    %c0_i32_0 = arith.constant 0 : i32
    %c0_i32_1 = arith.constant 0 : i32
    return %c0_i32, %c0_i32_0 : i32, i32
  }
  func.func @transform_4(%arg0: i32) -> (i32, i32) {
    %c0_i32 = arith.constant 0 : i32
    %c0_i32_0 = arith.constant 0 : i32
    %c0_i32_1 = arith.constant 0 : i32
    return %c0_i32, %c0_i32_0 : i32, i32
  }
  func.func @transform_5(%arg0: i32) -> (i32, i32) {
    %c0_i32 = arith.constant 0 : i32
    %c0_i32_0 = arith.constant 0 : i32
    return %arg0, %c0_i32 : i32, i32
  }
}

</mosaic_0001>

<bundles_post_ra>
// kernel: multi_conv_forward.1
= control target key start
LH: loop header
LB: loop body
LE: loop exit
PB: predicated region body
PF: predicated region fallthrough
CT: control target
= control target key end

     0   :  { %vm49_vm0 = vcmask 457728   ;;  %vm321_vm1 = vcmask 326656   ;;  %vm405_vm2 = vcmask 64512   ;;  %s836_s1 = inlined_call_operand.vmem [shape: f32[2,56,424], index: 1, kind: input, shape index: {}]   ;;  %s837_s0 = inlined_call_operand.vmem [shape: f32[8,56], index: 0, kind: input, shape index: {}]   ;;  %s838_s3 = inlined_call_operand.vmem [shape: f32[424,8], index: 3, kind: input, shape index: {}]   ;;  %s839_s4 = inlined_call_operand.vmem [shape: f32[1,8], index: 4, kind: input, shape index: {}]   ;;  %s840_s2 = inlined_call_operand.vmem [shape: f32[1,424], index: 2, kind: input, shape index: {}]   ;;  %s841_s5 = inlined_call_operand.vmem [shape: f32[8,8], index: 5, kind: output, shape index: {}]  }
   0x1   :  { %v45_v0 = vld [vmem:[%s836_s1 + $0xc0] sm:$0xff]  ;;  %v47_v1 = vld [vmem:[%s836_s1 + $0xd0] sm:$0xff]  ;;  %v46_v6 = vld [vmem:[%s836_s1 + $0xc8] sm:$0xff] }
   0x2   :  { %v41_v2 = vld [vmem:[%s836_s1 + $0xa0] sm:$0xff]  ;;  %62 = vmatpush.msra.mxu3 %v45_v0  ;;  %102 = vmatpush.msra.mxu2 %v47_v1  ;;  %v43_v3 = vld [vmem:[%s836_s1 + $0xb0] sm:$0xff]  ;;  %v42_v7 = vld [vmem:[%s836_s1 + $0xa8] sm:$0xff] }
   0x3   :  { %v37_v4 = vld [vmem:[%s836_s1 + $0x80] sm:$0xff]  ;;  %v39_v5 = vld [vmem:[%s836_s1 + $0x90] sm:$0xff]  ;;  %82 = vmatpush.msra.mxu1 %v46_v6  ;;  %v38_v10 = vld [vmem:[%s836_s1 + $0x88] sm:$0xff] }
   0x4   :  { %63 = vmatpush.msra.mxu3 %v41_v2  ;;  %103 = vmatpush.msra.mxu2 %v43_v3  ;;  %v33_v8 = vld [vmem:[%s836_s1 + $0x60] sm:$0xff]  ;;  %v35_v9 = vld [vmem:[%s836_s1 + $0x70] sm:$0xff]  ;;  %v34_v13 = vld [vmem:[%s836_s1 + $0x68] sm:$0xff] }
   0x5   :  { %83 = vmatpush.msra.mxu1 %v42_v7  ;;  %v29_v11 = vld [vmem:[%s836_s1 + $0x40] sm:$0xff]  ;;  %v31_v12 = vld [vmem:[%s836_s1 + $0x50] sm:$0xff]  ;;  %v30_v17 = vld [vmem:[%s836_s1 + $0x48] sm:$0xff] }
   0x6   :  { %64 = vmatpush.msra.mxu3 %v37_v4  ;;  %104 = vmatpush.msra.mxu2 %v39_v5  ;;  %v25_v14 = vld [vmem:[%s836_s1 + $0x20] sm:$0xff]  ;;  %v27_v15 = vld [vmem:[%s836_s1 + $0x30] sm:$0xff]  ;;  %v48_v21 = vld [vmem:[%s836_s1 + $0xd8] sm:$0xff] }
   0x7   :  { %84 = vmatpush.msra.mxu1 %v38_v10  ;;  %v439_v16 = vld [vmem:[%s836_s1 + $0x1a0] sm:$0xff]  ;;  %v23_v20 = vld [vmem:[%s836_s1 + $0x10] sm:$0xff]  ;;  %v26_v23 = vld [vmem:[%s836_s1 + $0x28] sm:$0xff] }
   0x8   :  { %65 = vmatpush.msra.mxu3 %v33_v8  ;;  %105 = vmatpush.msra.mxu2 %v35_v9  ;;  %v435_v18 = vld [vmem:[%s836_s1 + $0x180] sm:$0xff]  ;;  %v441_v22 = vld [vmem:[%s836_s1 + $0x1b0] sm:$0xff]  ;;  %v44_v25 = vld [vmem:[%s836_s1 + $0xb8] sm:$0xff] }
   0x9   :  { %85 = vmatpush.msra.mxu1 %v34_v13  ;;  %v21_v19 = vld [vmem:[%s836_s1] sm:$0xff]  ;;  %171 = vmatpush.msra.mxu0 %v439_v16  ;;  %v437_v26 = vld [vmem:[%s836_s1 + $0x190] sm:$0xff]  ;;  %v22_v27 = vld [vmem:[%s836_s1 + $0x8] sm:$0xff] }
   0xa   :  { %66 = vmatpush.msra.mxu3 %v29_v11  ;;  %106 = vmatpush.msra.mxu2 %v31_v12  ;;  %v554_v24 = vld [vmem:[%s837_s0] sm:$0xff]  ;;  %v40_v29 = vld [vmem:[%s836_s1 + $0x98] sm:$0xff]  ;;  %v433_v30 = vld [vmem:[%s836_s1 + $0x170] sm:$0xff] }
   0xb   :  { %86 = vmatpush.msra.mxu1 %v30_v17  ;;  %172 = vmatpush.msra.mxu0 %v435_v18  ;;  %v431_v28 = vld [vmem:[%s836_s1 + $0x160] sm:$0xff]  ;;  %v440_v31 = vld [vmem:[%s836_s1 + $0x1a8] sm:$0xff]  ;;  %v36_v33 = vld [vmem:[%s836_s1 + $0x78] sm:$0xff] }
   0xc   :  { %67 = vmatpush.msra.mxu3 %v25_v14  ;;  %107 = vmatpush.msra.mxu2 %v27_v15  ;;  %v427_v32 = vld [vmem:[%s836_s1 + $0x140] sm:$0xff]  ;;  %v429_v34 = vld [vmem:[%s836_s1 + $0x150] sm:$0xff]  ;;  %v436_v35 = vld [vmem:[%s836_s1 + $0x188] sm:$0xff] }
   0xd   :  { %87 = vmatpush.msra.mxu1 %v26_v23  ;;  %173 = vmatpush.msra.mxu0 %v431_v28  ;;  %v32_v36 = vld [vmem:[%s836_s1 + $0x58] sm:$0xff]  ;;  %v425_v37 = vld [vmem:[%s836_s1 + $0x130] sm:$0xff]  ;;  %v432_v38 = vld [vmem:[%s836_s1 + $0x168] sm:$0xff] }
   0xe   :  { %68 = vmatpush.msra.mxu3 %v21_v19  ;;  %108 = vmatpush.msra.mxu2 %v23_v20  ;;  %v423_v39 = vld [vmem:[%s836_s1 + $0x120] sm:$0xff]  ;;  %v28_v40 = vld [vmem:[%s836_s1 + $0x38] sm:$0xff]  ;;  %v421_v41 = vld [vmem:[%s836_s1 + $0x110] sm:$0xff] }
   0xf   :  { %413 = vmatmul.msk.f32.vlgmr.msra.gmra.mxu2 %vm49_vm0, %v554_v24  ;;  %88 = vmatpush.msra.mxu1 %v22_v27  ;;  %v428_v42 = vld [vmem:[%s836_s1 + $0x148] sm:$0xff]  ;;  %v24_v43 = vld [vmem:[%s836_s1 + $0x18] sm:$0xff]  ;;  %v419_v44 = vld [vmem:[%s836_s1 + $0x100] sm:$0xff] }
  0x10   :  { %122 = vmatpush.msrb.mxu3 %v48_v21  ;;  %211 = vmatpush.msrb.mxu2 %v441_v22  ;;  %v417_v45 = vld [vmem:[%s836_s1 + $0xf0] sm:$0xff]  ;;  %v424_v46 = vld [vmem:[%s836_s1 + $0x128] sm:$0xff]  ;;  %v442_v47 = vld [vmem:[%s836_s1 + $0x1b8] sm:$0xff] }
  0x11   :  { %191 = vmatpush.msrb.mxu1 %v440_v31  ;;  %174 = vmatpush.msra.mxu0 %v427_v32  ;;  %v415_v48 = vld [vmem:[%s836_s1 + $0xe0] sm:$0xff]  ;;  %v420_v49 = vld [vmem:[%s836_s1 + $0x108] sm:$0xff]  ;;  %v438_v50 = vld [vmem:[%s836_s1 + $0x198] sm:$0xff] }
  0x12   :  { %123 = vmatpush.msrb.mxu3 %v44_v25  ;;  %212 = vmatpush.msrb.mxu2 %v437_v26  ;;  %v416_v51 = vld [vmem:[%s836_s1 + $0xe8] sm:$0xff]  ;;  %v434_v52 = vld [vmem:[%s836_s1 + $0x178] sm:$0xff]  ;;  %v278_v57 = vld [vmem:[%s838_s3 + $0x70] sm:$0xff] }
  0x13   :  { %192 = vmatpush.msrb.mxu1 %v436_v35  ;;  %411 = vmatmul.msk.f32.vlgmr.msra.gmra.mxu3 %vm49_vm0, %v554_v24  ;;  %v279_v53 = vld [vmem:[%s838_s3 + $0x78] sm:$0xff]  ;;  %v294_v58 = vld [vmem:[%s838_s3 + $0xf0] sm:$0xff]  ;;  %v277_v61 = vld [vmem:[%s838_s3 + $0x68] sm:$0xff] }
  0x14   :  { %124 = vmatpush.msrb.mxu3 %v40_v29  ;;  %213 = vmatpush.msrb.mxu2 %v433_v30  ;;  %v295_v54 = vld [vmem:[%s838_s3 + $0xf8] sm:$0xff]  ;;  %v310_v60 = vld [vmem:[%s838_s3 + $0x170] sm:$0xff]  ;;  %v293_v62 = vld [vmem:[%s838_s3 + $0xe8] sm:$0xff] }
  0x15   :  { %193 = vmatpush.msrb.mxu1 %v432_v38  ;;  %175 = vmatpush.msra.mxu0 %v423_v39  ;;  %v430_v55 = vld [vmem:[%s836_s1 + $0x158] sm:$0xff]  ;;  %v309_v0 = vld [vmem:[%s838_s3 + $0x168] sm:$0xff]  ;;  %v276_v1 = vld [vmem:[%s838_s3 + $0x60] sm:$0xff] }
  0x16   :  { %125 = vmatpush.msrb.mxu3 %v36_v33  ;;  %214 = vmatpush.msrb.mxu2 %v429_v34  ;;  %v311_v56 = vld [vmem:[%s838_s3 + $0x178] sm:$0xff]  ;;  %v292_v2 = vld [vmem:[%s838_s3 + $0xe0] sm:$0xff]  ;;  %v274_v8 = vld [vmem:[%s838_s3 + $0x50] sm:$0xff] }
  0x17   :  { %412 = vmatmul.msk.f32.vlgmr.msra.gmra.mxu1 %vm49_vm0, %v554_v24  ;;  %176 = vmatpush.msra.mxu0 %v419_v44  ;;  %v426_v59 = vld [vmem:[%s836_s1 + $0x138] sm:$0xff]  ;;  %v308_v4 = vld [vmem:[%s838_s3 + $0x160] sm:$0xff]  ;;  %v290_v9 = vld [vmem:[%s838_s3 + $0xd0] sm:$0xff] }
  0x18   :  { %126 = vmatpush.msrb.mxu3 %v32_v36  ;;  %215 = vmatpush.msrb.mxu2 %v425_v37  ;;  %v422_v63 = vld [vmem:[%s836_s1 + $0x118] sm:$0xff]  ;;  %v306_v10 = vld [vmem:[%s838_s3 + $0x150] sm:$0xff]  ;;  %v273_v11 = vld [vmem:[%s838_s3 + $0x48] sm:$0xff] }
  0x19   :  { %194 = vmatpush.msrb.mxu1 %v428_v42  ;;  %177 = vmatpush.msra.mxu0 %v415_v48  ;;  %v418_v3 = vld [vmem:[%s836_s1 + $0xf8] sm:$0xff]  ;;  %v289_v12 = vld [vmem:[%s838_s3 + $0xc8] sm:$0xff]  ;;  %v272_v14 = vld [vmem:[%s838_s3 + $0x40] sm:$0xff] }
  0x1a   :  { %127 = vmatpush.msrb.mxu3 %v28_v40  ;;  %216 = vmatpush.msrb.mxu2 %v421_v41  ;;  %v275_v5 = vld [vmem:[%s838_s3 + $0x58] sm:$0xff]  ;;  %v305_v13 = vld [vmem:[%s838_s3 + $0x148] sm:$0xff]  ;;  %v288_v15 = vld [vmem:[%s838_s3 + $0xc0] sm:$0xff] }
  0x1b   :  { %195 = vmatpush.msrb.mxu1 %v424_v46  ;;  %443 = vmatmul.msk.f32.vlgmr.msra.gmra.mxu0 %vm49_vm0, %v554_v24  ;;  %v291_v6 = vld [vmem:[%s838_s3 + $0xd8] sm:$0xff]  ;;  %v304_v16 = vld [vmem:[%s838_s3 + $0x140] sm:$0xff]  ;;  %v270_v18 = vld [vmem:[%s838_s3 + $0x30] sm:$0xff] }
  0x1c   :  { %128 = vmatpush.msrb.mxu3 %v24_v43  ;;  %217 = vmatpush.msrb.mxu2 %v417_v45  ;;  %v307_v7 = vld [vmem:[%s838_s3 + $0x158] sm:$0xff]  ;;  %v269_v21 = vld [vmem:[%s838_s3 + $0x28] sm:$0xff]  ;;  %v286_v22 = vld [vmem:[%s838_s3 + $0xb0] sm:$0xff] }
  0x1d   :  { %445 = vmatmul.msk.f32.vlgmr.msrb.gmra.mxu2 %vm49_vm0, %v554_v24  ;;  %196 = vmatpush.msrb.mxu1 %v420_v49  ;;  %v271_v17 = vld [vmem:[%s838_s3 + $0x38] sm:$0xff]  ;;  %v302_v23 = vld [vmem:[%s838_s3 + $0x130] sm:$0xff]  ;;  %v285_v25 = vld [vmem:[%s838_s3 + $0xa8] sm:$0xff] }
  0x1e   :  { %231 = vmatpush.msra.mxu3 %v442_v47  ;;  %325 = vmatpush.msrb.mxu0 %v279_v53  ;;  %v287_v19 = vld [vmem:[%s838_s3 + $0xb8] sm:$0xff]  ;;  %v301_v26 = vld [vmem:[%s838_s3 + $0x128] sm:$0xff]  ;;  %v284_v28 = vld [vmem:[%s838_s3 + $0xa0] sm:$0xff] }
  0x1f   :  { %197 = vmatpush.msrb.mxu1 %v416_v51  ;;  %414 = vmatmul.msk.f32.vlgmr.msrb.gmra.mxu3 %vm49_vm0, %v554_v24  ;;  %v303_v20 = vld [vmem:[%s838_s3 + $0x138] sm:$0xff]  ;;  %v300_v29 = vld [vmem:[%s838_s3 + $0x120] sm:$0xff]  ;;  %v266_v30 = vld [vmem:[%s838_s3 + $0x10] sm:$0xff] }
  0x20   :  { %232 = vmatpush.msra.mxu3 %v438_v50  ;;  %444 = vmatmul.msk.f32.vlgmr.msrb.gmra.mxu1 %vm49_vm0, %v554_v24  ;;  %v267_v27 = vld [vmem:[%s838_s3 + $0x18] sm:$0xff]  ;;  %v265_v33 = vld [vmem:[%s838_s3 + $0x8] sm:$0xff]  ;;  %v282_v34 = vld [vmem:[%s838_s3 + $0x90] sm:$0xff] }
  0x21   :  { %345 = vmatpush.msra.mxu1 %v295_v54  ;;  %365 = vmatpush.msra.mxu2 %v311_v56  ;;  %v283_v31 = vld [vmem:[%s838_s3 + $0x98] sm:$0xff]  ;;  %v298_v35 = vld [vmem:[%s838_s3 + $0x110] sm:$0xff]  ;;  %v264_v36 = vld [vmem:[%s838_s3] sm:$0xff] }
  0x22   :  { %233 = vmatpush.msra.mxu3 %v434_v52  ;;  %326 = vmatpush.msrb.mxu0 %v278_v57  ;;  %v299_v32 = vld [vmem:[%s838_s3 + $0x118] sm:$0xff]  ;;  %v281_v37 = vld [vmem:[%s838_s3 + $0x88] sm:$0xff]  ;;  %v280_v39 = vld [vmem:[%s838_s3 + $0x80] sm:$0xff] }
  0x23   :  { %346 = vmatpush.msra.mxu1 %v294_v58  ;;  %366 = vmatpush.msra.mxu2 %v310_v60  ;;  %v297_v38 = vld [vmem:[%s838_s3 + $0x108] sm:$0xff]  ;;  %v296_v40 = vld [vmem:[%s838_s3 + $0x100] sm:$0xff]  ;;  %v315_v42 = vld [vmem:[%s838_s3 + $0x198] sm:$0xff] }
  0x24   :  { %234 = vmatpush.msra.mxu3 %v430_v55  ;;  %327 = vmatpush.msrb.mxu0 %v277_v61  ;;  %v316_v41 = vld [vmem:[%s838_s3 + $0x1a0] sm:$0xff]  ;;  %v314_v43 = vld [vmem:[%s838_s3 + $0x190] sm:$0xff]  ;;  %v313_v44 = vld [vmem:[%s838_s3 + $0x188] sm:$0xff] }
  0x25   :  { %347 = vmatpush.msra.mxu1 %v293_v62  ;;  %367 = vmatpush.msra.mxu2 %v309_v0  ;;  %v312_v45 = vld [vmem:[%s838_s3 + $0x180] sm:$0xff] }
  0x26   :  { %235 = vmatpush.msra.mxu3 %v426_v59  ;;  %328 = vmatpush.msrb.mxu0 %v276_v1  ;;  %v246_v48 = vld [vmem:[%s840_s2] sm:$0xf] }
  0x27   :  { %348 = vmatpush.msra.mxu1 %v292_v2  ;;  %368 = vmatpush.msra.mxu2 %v308_v4  ;;  %v248_v50 = vperm.slane %v246_v48, 0  ;;  %v249_v53 = vperm.slane %v246_v48, 1  ;;  %v250_v57 = vperm.slane %v246_v48, 2  ;;  %v251_v2 = vperm.slane %v246_v48, 3 }
  0x28   :  { %236 = vmatpush.msra.mxu3 %v422_v63  ;;  %329 = vmatpush.msrb.mxu0 %v275_v5 }
  0x29   :  { %349 = vmatpush.msra.mxu1 %v291_v6  ;;  %369 = vmatpush.msra.mxu2 %v307_v7  ;;  %v448_v7 = vld [vmem:[%s839_s4] ss:$0 sm:$0xff] }
  0x2a   :  { %237 = vmatpush.msra.mxu3 %v418_v3  ;;  %330 = vmatpush.msrb.mxu0 %v274_v8 }
  0x2b   :  { %446 = vmatmul.msk.f32.vlgmr.msra.gmra.mxu3 %vm49_vm0, %v554_v24  ;;  %350 = vmatpush.msra.mxu1 %v290_v9  ;;  %v268_v24 = vld [vmem:[%s838_s3 + $0x20] sm:$0xff] }
  0x2c   :  { %370 = vmatpush.msra.mxu2 %v306_v10  ;;  %331 = vmatpush.msrb.mxu0 %v273_v11 }
  0x2d   :  { %351 = vmatpush.msra.mxu1 %v289_v12  ;;  %396 = vmatpush.msrb.mxu3 %v316_v41 }
  0x2e   :  { %371 = vmatpush.msra.mxu2 %v305_v13  ;;  %332 = vmatpush.msrb.mxu0 %v272_v14 }
  0x2f   :  { %352 = vmatpush.msra.mxu1 %v288_v15  ;;  %397 = vmatpush.msrb.mxu3 %v315_v42 }
  0x30   :  { %372 = vmatpush.msra.mxu2 %v304_v16  ;;  %333 = vmatpush.msrb.mxu0 %v271_v17 }
  0x31   :  { %353 = vmatpush.msra.mxu1 %v287_v19  ;;  %398 = vmatpush.msrb.mxu3 %v314_v43 }
  0x32   :  { %334 = vmatpush.msrb.mxu0 %v270_v18  ;;  %373 = vmatpush.msra.mxu2 %v303_v20 }
  0x33   :  { %354 = vmatpush.msra.mxu1 %v286_v22  ;;  %399 = vmatpush.msrb.mxu3 %v313_v44 }
  0x34   :  { %335 = vmatpush.msrb.mxu0 %v269_v21  ;;  %374 = vmatpush.msra.mxu2 %v302_v23 }
  0x35   :  { %355 = vmatpush.msra.mxu1 %v285_v25  ;;  %400 = vmatpush.msrb.mxu3 %v312_v45 }
  0x36   :  { %336 = vmatpush.msrb.mxu0 %v268_v24  ;;  %375 = vmatpush.msra.mxu2 %v301_v26 }
  0x37   :  { %356 = vmatpush.msra.mxu1 %v284_v28 }
  0x38   :  { %337 = vmatpush.msrb.mxu0 %v267_v27  ;;  %376 = vmatpush.msra.mxu2 %v300_v29 }
  0x39   :  { %357 = vmatpush.msra.mxu1 %v283_v31 }
  0x3a   :  { %338 = vmatpush.msrb.mxu0 %v266_v30  ;;  %377 = vmatpush.msra.mxu2 %v299_v32 }
  0x3b   :  { %358 = vmatpush.msra.mxu1 %v282_v34 }
  0x3c   :  { %339 = vmatpush.msrb.mxu0 %v265_v33  ;;  %378 = vmatpush.msra.mxu2 %v298_v35 }
  0x3d   :  { %359 = vmatpush.msra.mxu1 %v281_v37 }
  0x3e   :  { %340 = vmatpush.msrb.mxu0 %v264_v36  ;;  %379 = vmatpush.msra.mxu2 %v297_v38 }
  0x3f   :  { %360 = vmatpush.msra.mxu1 %v280_v39 }
  0x40   :  { %380 = vmatpush.msra.mxu2 %v296_v40 }
  0x92   :  { %v110_v47 = vpop.f32.mrf.mxu2 }
  0x94   :  { %v90_v46 = vpop.f32.mrf.mxu1 }
  0x96   :  { %v70_v49 = vpop.f32.mrf.mxu3 }
  0x98   :  { %v179_v51 = vpop.f32.mrf.mxu0 }
  0x99   :  { %v242_v52 = vmax.f32 %v70_v49, %v179_v51 }
  0x9b   :  { %v256_v55 = vadd.f32 %v248_v50, %v242_v52 }
  0x9d   :  { %v199_v54 = vpop.f32.mrf.mxu1  ;;  %v260_v59 = vmax.f32 %v256_v55, 0.0 }
  0x9e   :  { %v243_v56 = vmax.f32 %v90_v46, %v199_v54 }
  0x9f   :  { %341 = vmatmul.f32.vlgmr.msrb.gmra.mxu0 %v260_v59 }
  0xa0   :  { %v219_v58 = vpop.f32.mrf.mxu2  ;;  %v257_v60 = vadd.f32 %v249_v53, %v243_v56 }
  0xa1   :  { %v244_v61 = vmax.f32 %v110_v47, %v219_v58 }
  0xa2   :  { %v261_v62 = vmax.f32 %v257_v60, 0.0  ;;  %v130_v0 = vpop.f32.mrf.mxu3 }
  0xa3   :  { %v258_v63 = vadd.f32 %v250_v57, %v244_v61 }
  0xa4   :  { %361 = vmatmul.f32.vlgmr.msra.gmra.mxu1 %v261_v62 }
  0xa5   :  { %v262_v1 = vmax.f32 %v258_v63, 0.0 }
  0xa7   :  { %381 = vmatmul.f32.vlgmr.msra.gmra.mxu2 %v262_v1 }
  0xae   :  { %v239_v3 = vpop.f32.mrf.mxu3 }
  0xaf   :  { %v245_v4 = vmax.f32 %v130_v0, %v239_v3 }
  0xb1   :  { %v259_v5 = vadd.f32 %v251_v2, %v245_v4 }
  0xb3   :  { %v263_v6 = vmax.f32 %v259_v5, 0.0 }
  0xb5   :  { %447 = vmatmul.msk.f32.vlgmr.msrb.gmra.mxu3 %vm321_vm1, %v263_v6 }
 0x11c   :  { %v342_v8 = vpop.f32.mrf.mxu0 }
 0x11d   :  { %v343_v9 = vadd.f32 %v448_v7, %v342_v8 }
 0x121   :  { %v362_v10 = vpop.f32.mrf.mxu1 }
 0x122   :  { %v363_v12 = vadd.f32 %v362_v10, %v343_v9 }
 0x12a   :  { %v382_v11 = vpop.f32.mrf.mxu2 }
 0x12b   :  { %v383_v13 = vadd.f32 %v382_v11, %v363_v12 }
 0x138   :  { %v402_v14 = vpop.f32.mrf.mxu3 }
 0x139   :  { %v403_v15 = vadd.f32 %v402_v14, %v383_v13 }
 0x13b   :  { %406 = vst.msk [vmem:[%s841_s5] sm:$0xff] %vm405_vm2, %v403_v15 }

</bundles_post_ra>
